<compile_context>
chip_gen: v5e
topology: v5e:2x2
jax: 0.10.0
libtpu: 0.0.40
codegen_flags: <defaults>
</compile_context>

<pallas_src>
import functools

import jax
import jax.numpy as jnp
from jax import lax
from jax.experimental import pallas as pl
from jax.experimental.pallas import tpu as pltpu


def _avgpool_kernel(src_ref, pos_ref, wp_ref, wq_ref, bias_ref, gamma_ref,
                    beta_ref, out_ref, ssum_ref, psum_ref, *,
                    pool_conv, pool_norm, eps, hw_total, hw_tile, mask_tail):
    # src_ref/pos_ref: (Bblk, C, Thw)  native dtype, HW on the lane axis.
    # wp/wq: (C_in, C_out); bias/gamma/beta: (1, C).
    # ssum_ref/psum_ref: (Bblk, C) f32 partial-sum accumulators (scratch).
    h = pl.program_id(1)
    nhw = pl.num_programs(1)

    @pl.when(h == 0)
    def _init():
        ssum_ref[...] = jnp.zeros_like(ssum_ref)
        psum_ref[...] = jnp.zeros_like(psum_ref)

    src = src_ref[...]
    pos = pos_ref[...]

    if mask_tail:
        # Last HW tile is partial: zero out-of-range lanes before reducing.
        lane = lax.broadcasted_iota(jnp.int32, src.shape, dimension=2)
        valid = (h * hw_tile + lane) < hw_total
        src = jnp.where(valid, src, 0)
        pos = jnp.where(valid, pos, 0)

    # Lane-axis reduction; accumulate in f32 regardless of input dtype.
    ssum_ref[...] += jnp.sum(src, axis=-1, dtype=jnp.float32)   # (Bblk, C)
    psum_ref[...] += jnp.sum(pos, axis=-1, dtype=jnp.float32)   # (Bblk, C)

    @pl.when(h == nhw - 1)
    def _finalize():
        inv_hw = jnp.float32(1.0 / hw_total)
        pooled_src = ssum_ref[...] * inv_hw                     # (Bblk, C)
        pooled_pos = psum_ref[...] * inv_hw                     # (Bblk, C)

        if pool_conv:
            # 1x1 conv on the pooled vectors (tiny MXU matmuls), bias folded.
            out = (jnp.dot(pooled_src, wp_ref[...].astype(jnp.float32),
                           preferred_element_type=jnp.float32)
                   + jnp.dot(pooled_pos, wq_ref[...].astype(jnp.float32),
                             preferred_element_type=jnp.float32)
                   + bias_ref[...].astype(jnp.float32))
        else:
            out = pooled_src + pooled_pos

        if pool_norm:
            # LayerNorm([d_model,1,1]) == per-row normalization over C (lanes).
            mu = jnp.mean(out, axis=-1, keepdims=True)
            var = jnp.mean((out - mu) ** 2, axis=-1, keepdims=True)
            out = (out - mu) * lax.rsqrt(var + eps)
            out = out * gamma_ref[...].astype(jnp.float32) \
                  + beta_ref[...].astype(jnp.float32)

        out_ref[...] = out.reshape(out_ref.shape).astype(out_ref.dtype)


def avg_pool_module(src, mask, pos, params, *, pool_conv=True, pool_norm=True):
    """Forward of AvgPoolModule.  src/pos: NCHW.
    Returns (out (B,C,1,1), mask (B,1,1) bool, None)."""
    del mask  # the PyTorch forward ignores the incoming mask
    B, C, H, W = src.shape
    HW = H * W
    # Free reshape of contiguous NCHW -> (B, C, HW); no transpose / extra HBM pass.
    src_f = src.reshape(B, C, HW)
    pos_f = pos.reshape(B, C, HW)

    wp, bp, wq, bq, gamma, beta = params
    if pool_conv:
        bias = bp + bq                       # fold the two conv biases once
    else:
        bias = jnp.zeros((1, C), dtype=src.dtype)

    itemsize = jnp.dtype(src.dtype).itemsize
    budget = 2 * 1024 * 1024                 # ~2 MiB per input block (x2 inputs x2 bufs)

    if C * HW * itemsize <= budget:
        thw = HW                             # full spatial extent in one tile
        bblk = max(1, min(B, budget // (C * HW * itemsize)))
    else:
        bblk = 1                             # tile HW (multiple of 128 for lane DMA)
        thw = max(128, (budget // (C * itemsize)) // 128 * 128)
        thw = min(thw, HW)
    if B >= 2:
        # keep >=2 parallel batch blocks so v7x's 2 TensorCores both get work
        bblk = min(bblk, pl.cdiv(B, 2))
    nb = pl.cdiv(B, bblk)
    nhw = pl.cdiv(HW, thw)
    mask_tail = (HW % thw) != 0

    kernel = functools.partial(
        _avgpool_kernel, pool_conv=pool_conv, pool_norm=pool_norm, eps=1e-5,
        hw_total=HW, hw_tile=thw, mask_tail=mask_tail)

    out = pl.pallas_call(
        kernel,
        out_shape=jax.ShapeDtypeStruct((B, 1, C), src.dtype),
        grid=(nb, nhw),
        in_specs=[
            pl.BlockSpec((bblk, C, thw), lambda b, h: (b, 0, h)),   # src (B,C,HW)
            pl.BlockSpec((bblk, C, thw), lambda b, h: (b, 0, h)),   # pos (B,C,HW)
            pl.BlockSpec((C, C), lambda b, h: (0, 0)),              # pool_conv W (C_in,C_out)
            pl.BlockSpec((C, C), lambda b, h: (0, 0)),              # pos_conv  W (C_in,C_out)
            pl.BlockSpec((1, C), lambda b, h: (0, 0)),              # folded bias bp+bq
            pl.BlockSpec((1, C), lambda b, h: (0, 0)),              # LN gamma
            pl.BlockSpec((1, C), lambda b, h: (0, 0)),              # LN beta
        ],
        out_specs=pl.BlockSpec((bblk, 1, C), lambda b, h: (b, 0, 0)),
        scratch_shapes=[pltpu.VMEM((bblk, C), jnp.float32),         # sum(src) accumulator
                        pltpu.VMEM((bblk, C), jnp.float32)],        # sum(pos) accumulator
        compiler_params=pltpu.CompilerParams(
            dimension_semantics=("parallel", "arbitrary"),
            vmem_limit_bytes=64 << 20),
    )(src_f, pos_f, wp, wq, bias, gamma, beta)

    out_nchw = out.reshape(B, C, 1, 1)
    new_mask = jnp.zeros((B, 1, 1), dtype=jnp.bool_)
    return out_nchw, new_mask, None


def _reference(src, pos, params, pool_conv, pool_norm, eps=1e-5):
    """Pure-JAX NCHW reference mirroring the PyTorch forward."""
    wp, bp, wq, bq, gamma, beta = params
    B, C, H, W = src.shape
    if pool_conv:
        src = jnp.einsum('bihw,io->bohw', src, wp) + bp.reshape(1, C, 1, 1)
        pos = jnp.einsum('bihw,io->bohw', pos, wq) + bq.reshape(1, C, 1, 1)
    out = src + pos
    out = jnp.mean(out, axis=(2, 3), keepdims=True)            # (B, C, 1, 1)
    if pool_norm:
        mu = jnp.mean(out, axis=(1, 2, 3), keepdims=True)
        var = jnp.mean((out - mu) ** 2, axis=(1, 2, 3), keepdims=True)
        out = (out - mu) / jnp.sqrt(var + eps)
        out = out * gamma.reshape(1, C, 1, 1) + beta.reshape(1, C, 1, 1)
    mask = jnp.zeros((B, 1, 1), dtype=jnp.bool_)
    return out, mask, None


if __name__ == "__main__":
    B, d_model, H, W = 2, 32, 8, 8
    key = jax.random.PRNGKey(0)
    k_src, k_pos, k_wp, k_bp, k_wq, k_bq = jax.random.split(key, 6)

    src = jax.random.normal(k_src, (B, d_model, H, W), dtype=jnp.float32)
    pos = jax.random.normal(k_pos, (B, d_model, H, W), dtype=jnp.float32)
    mask = jnp.zeros((B, H, W), dtype=jnp.bool_)   # unused by the forward

    # Deterministic parameter init (shapes from nn.Conv2d(d,d,1) / nn.LayerNorm([d,1,1])).
    # Conv weights stored pre-transposed as (C_in, C_out); biases / LN params as (1, C).
    wp = jax.random.normal(k_wp, (d_model, d_model), dtype=jnp.float32) * 0.05
    bp = jax.random.normal(k_bp, (1, d_model), dtype=jnp.float32) * 0.05
    wq = jax.random.normal(k_wq, (d_model, d_model), dtype=jnp.float32) * 0.05
    bq = jax.random.normal(k_bq, (1, d_model), dtype=jnp.float32) * 0.05
    gamma = jnp.ones((1, d_model), dtype=jnp.float32)
    beta = jnp.zeros((1, d_model), dtype=jnp.float32)
    params = (wp, bp, wq, bq, gamma, beta)

    out, new_mask, third = avg_pool_module(src, mask, pos, params,
                                           pool_conv=True, pool_norm=True)
    jax.block_until_ready(out)

    ref_out, ref_mask, _ = _reference(src, pos, params, True, True)
    assert out.shape == (B, d_model, 1, 1)
    assert new_mask.shape == (B, 1, 1) and new_mask.dtype == jnp.bool_
    assert third is None
    # Pool-before-conv reorders the FP reduction -> tiny (~1e-6) differences expected.
    assert jnp.allclose(out, ref_out, atol=1e-4, rtol=1e-4), "mismatch vs reference"
    assert jnp.array_equal(new_mask, ref_mask)

    print("KERNEL_OK")
</pallas_src>

<mosaic_0001>
module attributes {stable_mosaic.version = 11 : i64} {
  func.func @_avgpool_kernel(%arg0: i32, %arg1: i32, %arg2: memref<1x32x64xf32, #tpu.memory_space<vmem>>, %arg3: memref<1x32x64xf32, #tpu.memory_space<vmem>>, %arg4: memref<32x32xf32, #tpu.memory_space<vmem>>, %arg5: memref<32x32xf32, #tpu.memory_space<vmem>>, %arg6: memref<1x32xf32, #tpu.memory_space<vmem>>, %arg7: memref<1x32xf32, #tpu.memory_space<vmem>>, %arg8: memref<1x32xf32, #tpu.memory_space<vmem>>, %arg9: memref<1x1x32xf32, #tpu.memory_space<vmem>>, %arg10: memref<1x32xf32, #tpu.memory_space<vmem>>, %arg11: memref<1x32xf32, #tpu.memory_space<vmem>>) attributes {dimension_semantics = [#tpu.dimension_semantics<parallel>, #tpu.dimension_semantics<arbitrary>], iteration_bounds = array<i64: 2, 1>, scalar_prefetch = 0 : i64, scratch_operands = 2 : i64, tpu.core_type = #tpu.core_type<tc>, window_params = [{transform_indices = @transform_0, window_bounds = array<i64: 1, 32, 64>}, {transform_indices = @transform_1, window_bounds = array<i64: 1, 32, 64>}, {pipeline_mode = #tpu.pipeline_mode<synchronous>, transform_indices = @transform_2, window_bounds = array<i64: 32, 32>}, {pipeline_mode = #tpu.pipeline_mode<synchronous>, transform_indices = @transform_3, window_bounds = array<i64: 32, 32>}, {pipeline_mode = #tpu.pipeline_mode<synchronous>, transform_indices = @transform_4, window_bounds = array<i64: 1, 32>}, {pipeline_mode = #tpu.pipeline_mode<synchronous>, transform_indices = @transform_5, window_bounds = array<i64: 1, 32>}, {pipeline_mode = #tpu.pipeline_mode<synchronous>, transform_indices = @transform_6, window_bounds = array<i64: 1, 32>}, {transform_indices = @transform_7, window_bounds = array<i64: 1, 1, 32>}]} {
    %c0_i32 = arith.constant 0 : i32
    %0 = arith.cmpi eq, %arg1, %c0_i32 : i32
    %1 = arith.extui %0 : i1 to i32
    %c0_i32_0 = arith.constant 0 : i32
    %2 = arith.cmpi ne, %1, %c0_i32_0 : i32
    scf.if %2 {
      %cst_17 = arith.constant 0.000000e+00 : f32
      %16 = vector.broadcast %cst_17 : f32 to vector<1x32xf32>
      %c0_18 = arith.constant 0 : index
      %c0_19 = arith.constant 0 : index
      %17 = vector.load %arg10[%c0_18, %c0_19] : memref<1x32xf32, #tpu.memory_space<vmem>>, vector<1x32xf32>
      tpu.vector_store %arg10[%c0_18, %c0_19], %16 {strides = array<i32>} : memref<1x32xf32, #tpu.memory_space<vmem>>, vector<1x32xf32>,
      %cst_20 = arith.constant 0.000000e+00 : f32
      %18 = vector.broadcast %cst_20 : f32 to vector<1x32xf32>
      %c0_21 = arith.constant 0 : index
      %c0_22 = arith.constant 0 : index
      %19 = vector.load %arg11[%c0_21, %c0_22] : memref<1x32xf32, #tpu.memory_space<vmem>>, vector<1x32xf32>
      tpu.vector_store %arg11[%c0_21, %c0_22], %18 {strides = array<i32>} : memref<1x32xf32, #tpu.memory_space<vmem>>, vector<1x32xf32>,
    } else {
    }
    %c0 = arith.constant 0 : index
    %c0_1 = arith.constant 0 : index
    %c0_2 = arith.constant 0 : index
    %3 = vector.load %arg2[%c0, %c0_1, %c0_2] : memref<1x32x64xf32, #tpu.memory_space<vmem>>, vector<1x32x64xf32>
    %c0_3 = arith.constant 0 : index
    %c0_4 = arith.constant 0 : index
    %c0_5 = arith.constant 0 : index
    %4 = vector.load %arg3[%c0_3, %c0_4, %c0_5] : memref<1x32x64xf32, #tpu.memory_space<vmem>>, vector<1x32x64xf32>
    %c0_6 = arith.constant 0 : index
    %c0_7 = arith.constant 0 : index
    %5 = vector.load %arg10[%c0_6, %c0_7] : memref<1x32xf32, #tpu.memory_space<vmem>>, vector<1x32xf32>
    %cst = arith.constant dense<0.000000e+00> : vector<1x32xf32>
    %6 = vector.multi_reduction <add>, %3, %cst [2] : vector<1x32x64xf32> to vector<1x32xf32>
    %7 = arith.addf %5, %6 : vector<1x32xf32>
    %c0_8 = arith.constant 0 : index
    %c0_9 = arith.constant 0 : index
    %8 = vector.load %arg10[%c0_8, %c0_9] : memref<1x32xf32, #tpu.memory_space<vmem>>, vector<1x32xf32>
    tpu.vector_store %arg10[%c0_8, %c0_9], %7 {strides = array<i32>} : memref<1x32xf32, #tpu.memory_space<vmem>>, vector<1x32xf32>,
    %c0_10 = arith.constant 0 : index
    %c0_11 = arith.constant 0 : index
    %9 = vector.load %arg11[%c0_10, %c0_11] : memref<1x32xf32, #tpu.memory_space<vmem>>, vector<1x32xf32>
    %cst_12 = arith.constant dense<0.000000e+00> : vector<1x32xf32>
    %10 = vector.multi_reduction <add>, %4, %cst_12 [2] : vector<1x32x64xf32> to vector<1x32xf32>
    %11 = arith.addf %9, %10 : vector<1x32xf32>
    %c0_13 = arith.constant 0 : index
    %c0_14 = arith.constant 0 : index
    %12 = vector.load %arg11[%c0_13, %c0_14] : memref<1x32xf32, #tpu.memory_space<vmem>>, vector<1x32xf32>
    tpu.vector_store %arg11[%c0_13, %c0_14], %11 {strides = array<i32>} : memref<1x32xf32, #tpu.memory_space<vmem>>, vector<1x32xf32>,
    %c0_i32_15 = arith.constant 0 : i32
    %13 = arith.cmpi eq, %arg1, %c0_i32_15 : i32
    %14 = arith.extui %13 : i1 to i32
    %c0_i32_16 = arith.constant 0 : i32
    %15 = arith.cmpi ne, %14, %c0_i32_16 : i32
    scf.if %15 {
      %c0_17 = arith.constant 0 : index
      %c0_18 = arith.constant 0 : index
      %16 = vector.load %arg10[%c0_17, %c0_18] : memref<1x32xf32, #tpu.memory_space<vmem>>, vector<1x32xf32>
      %cst_19 = arith.constant 1.562500e-02 : f32
      %17 = vector.broadcast %cst_19 : f32 to vector<1x32xf32>
      %18 = arith.mulf %16, %17 : vector<1x32xf32>
      %c0_20 = arith.constant 0 : index
      %c0_21 = arith.constant 0 : index
      %19 = vector.load %arg11[%c0_20, %c0_21] : memref<1x32xf32, #tpu.memory_space<vmem>>, vector<1x32xf32>
      %cst_22 = arith.constant 1.562500e-02 : f32
      %20 = vector.broadcast %cst_22 : f32 to vector<1x32xf32>
      %21 = arith.mulf %19, %20 : vector<1x32xf32>
      %c0_23 = arith.constant 0 : index
      %c0_24 = arith.constant 0 : index
      %22 = vector.load %arg4[%c0_23, %c0_24] : memref<32x32xf32, #tpu.memory_space<vmem>>, vector<32x32xf32>
      %cst_25 = arith.constant dense<0.000000e+00> : vector<1x32xf32>
      %23 = tpu.matmul %18, %22, %cst_25 {dimension_numbers = #tpu.dot_dimension_numbers<[1], [0], [0], [1], [0, 0, 1, 1], [], []>} : vector<1x32xf32>, vector<32x32xf32>, vector<1x32xf32> -> vector<1x32xf32>
      %c0_26 = arith.constant 0 : index
      %c0_27 = arith.constant 0 : index
      %24 = vector.load %arg5[%c0_26, %c0_27] : memref<32x32xf32, #tpu.memory_space<vmem>>, vector<32x32xf32>
      %cst_28 = arith.constant dense<0.000000e+00> : vector<1x32xf32>
      %25 = tpu.matmul %21, %24, %cst_28 {dimension_numbers = #tpu.dot_dimension_numbers<[1], [0], [0], [1], [0, 0, 1, 1], [], []>} : vector<1x32xf32>, vector<32x32xf32>, vector<1x32xf32> -> vector<1x32xf32>
      %26 = arith.addf %23, %25 : vector<1x32xf32>
      %c0_29 = arith.constant 0 : index
      %c0_30 = arith.constant 0 : index
      %27 = vector.load %arg6[%c0_29, %c0_30] : memref<1x32xf32, #tpu.memory_space<vmem>>, vector<1x32xf32>
      %28 = arith.addf %26, %27 : vector<1x32xf32>
      %cst_31 = arith.constant dense<0.000000e+00> : vector<1xf32>
      %29 = vector.multi_reduction <add>, %28, %cst_31 [1] : vector<1x32xf32> to vector<1xf32>
      %30 = vector.shape_cast %29 : vector<1xf32> to vector<1x1xf32>
      %cst_32 = arith.constant 3.200000e+01 : f32
      %31 = vector.broadcast %cst_32 : f32 to vector<1x1xf32>
      %32 = arith.divf %30, %31 : vector<1x1xf32>
      %33 = vector.broadcast %32 : vector<1x1xf32> to vector<1x32xf32>
      %34 = arith.subf %28, %33 : vector<1x32xf32>
      %35 = arith.mulf %34, %34 : vector<1x32xf32>
      %cst_33 = arith.constant dense<0.000000e+00> : vector<1xf32>
      %36 = vector.multi_reduction <add>, %35, %cst_33 [1] : vector<1x32xf32> to vector<1xf32>
      %37 = vector.shape_cast %36 : vector<1xf32> to vector<1x1xf32>
      %cst_34 = arith.constant 3.200000e+01 : f32
      %38 = vector.broadcast %cst_34 : f32 to vector<1x1xf32>
      %39 = arith.divf %37, %38 : vector<1x1xf32>
      %40 = vector.broadcast %32 : vector<1x1xf32> to vector<1x32xf32>
      %41 = arith.subf %28, %40 : vector<1x32xf32>
      %cst_35 = arith.constant 9.99999974E-6 : f32
      %42 = vector.broadcast %cst_35 : f32 to vector<1x1xf32>
      %43 = arith.addf %39, %42 : vector<1x1xf32>
      %44 = math.rsqrt %43 : vector<1x1xf32>
      %45 = vector.broadcast %44 : vector<1x1xf32> to vector<1x32xf32>
      %46 = arith.mulf %41, %45 : vector<1x32xf32>
      %c0_36 = arith.constant 0 : index
      %c0_37 = arith.constant 0 : index
      %47 = vector.load %arg7[%c0_36, %c0_37] : memref<1x32xf32, #tpu.memory_space<vmem>>, vector<1x32xf32>
      %48 = arith.mulf %46, %47 : vector<1x32xf32>
      %c0_38 = arith.constant 0 : index
      %c0_39 = arith.constant 0 : index
      %49 = vector.load %arg8[%c0_38, %c0_39] : memref<1x32xf32, #tpu.memory_space<vmem>>, vector<1x32xf32>
      %50 = arith.addf %48, %49 : vector<1x32xf32>
      %51 = vector.shape_cast %50 : vector<1x32xf32> to vector<1x1x32xf32>
      %c0_40 = arith.constant 0 : index
      %c0_41 = arith.constant 0 : index
      %c0_42 = arith.constant 0 : index
      %52 = vector.load %arg9[%c0_40, %c0_41, %c0_42] : memref<1x1x32xf32, #tpu.memory_space<vmem>>, vector<1x1x32xf32>
      tpu.vector_store %arg9[%c0_40, %c0_41, %c0_42], %51 {strides = array<i32>} : memref<1x1x32xf32, #tpu.memory_space<vmem>>, vector<1x1x32xf32>,
    } else {
    }
    return
  }
  func.func @transform_0(%arg0: i32, %arg1: i32) -> (i32, i32, i32) {
    %c0_i32 = arith.constant 0 : i32
    %c0_i32_0 = arith.constant 0 : i32
    return %arg0, %c0_i32, %arg1 : i32, i32, i32
  }
  func.func @transform_1(%arg0: i32, %arg1: i32) -> (i32, i32, i32) {
    %c0_i32 = arith.constant 0 : i32
    %c0_i32_0 = arith.constant 0 : i32
    return %arg0, %c0_i32, %arg1 : i32, i32, i32
  }
  func.func @transform_2(%arg0: i32, %arg1: i32) -> (i32, i32) {
    %c0_i32 = arith.constant 0 : i32
    %c0_i32_0 = arith.constant 0 : i32
    %c0_i32_1 = arith.constant 0 : i32
    return %c0_i32, %c0_i32_0 : i32, i32
  }
  func.func @transform_3(%arg0: i32, %arg1: i32) -> (i32, i32) {
    %c0_i32 = arith.constant 0 : i32
    %c0_i32_0 = arith.constant 0 : i32
    %c0_i32_1 = arith.constant 0 : i32
    return %c0_i32, %c0_i32_0 : i32, i32
  }
  func.func @transform_4(%arg0: i32, %arg1: i32) -> (i32, i32) {
    %c0_i32 = arith.constant 0 : i32
    %c0_i32_0 = arith.constant 0 : i32
    %c0_i32_1 = arith.constant 0 : i32
    return %c0_i32, %c0_i32_0 : i32, i32
  }
  func.func @transform_5(%arg0: i32, %arg1: i32) -> (i32, i32) {
    %c0_i32 = arith.constant 0 : i32
    %c0_i32_0 = arith.constant 0 : i32
    %c0_i32_1 = arith.constant 0 : i32
    return %c0_i32, %c0_i32_0 : i32, i32
  }
  func.func @transform_6(%arg0: i32, %arg1: i32) -> (i32, i32) {
    %c0_i32 = arith.constant 0 : i32
    %c0_i32_0 = arith.constant 0 : i32
    %c0_i32_1 = arith.constant 0 : i32
    return %c0_i32, %c0_i32_0 : i32, i32
  }
  func.func @transform_7(%arg0: i32, %arg1: i32) -> (i32, i32, i32) {
    %c0_i32 = arith.constant 0 : i32
    %c0_i32_0 = arith.constant 0 : i32
    %c0_i32_1 = arith.constant 0 : i32
    return %arg0, %c0_i32, %c0_i32_0 : i32, i32, i32
  }
}

</mosaic_0001>

<bundles_post_ra>
// kernel: tpu_custom_call.1
= control target key start
LH: loop header
LB: loop body
LE: loop exit
PB: predicated region body
PF: predicated region fallthrough
CT: control target
= control target key end

     0   :  { %s1469_s0 = inlined_call_operand.hbm [shape: f32[2,32,64], index: 0, kind: input, shape index: {}]   ;;  %s1470_s1 = inlined_call_operand.hbm [shape: f32[2,32,64], index: 1, kind: input, shape index: {}]   ;;  %s1471_s2 = inlined_call_operand.hbm [shape: f32[32,32], index: 2, kind: input, shape index: {}]   ;;  %s1472_s3 = inlined_call_operand.hbm [shape: f32[32,32], index: 3, kind: input, shape index: {}]   ;;  %s1473_s4 = inlined_call_operand.vmem [shape: f32[1,32], index: 4, kind: input, shape index: {}]   ;;  %s1474_s5 = inlined_call_operand.vmem [shape: f32[1,32], index: 5, kind: input, shape index: {}]   ;;  %s1475_s6 = inlined_call_operand.vmem [shape: f32[1,32], index: 6, kind: input, shape index: {}]   ;;  %s1476_s7 = inlined_call_operand.hbm [shape: f32[2,1,32], index: 7, kind: output, shape index: {}]  }
   0x1   :  { %1486 = sst [smem:[#allocation24_spill]] %s1471_s2 }
   0x2   :  { %1487 = sst [smem:[#allocation25_spill]] %s1472_s3 }
   0x3   :  { %12 = vsyncpa [#allocation5], 0 }
   0x4   :  { %14 = vsyncpa [#allocation5 + $0x1], 0 }
   0x5   :  { %15 = vsyncpa [#allocation8], 0 }
   0x6   :  { %17 = vsyncpa [#allocation8 + $0x1], 0 }
   0x7   :  { %18 = vsyncpa [#allocation11], 0 }
   0x8   :  { %19 = vsyncpa [#allocation6], 0 }
   0x9   :  { %21 = vsyncpa [#allocation6 + $0x1], 0  ;;  %s1261_s24 = smov 0   ;;  %s1263_s25 = smov 0  }
   0xa   :  { %s1265_s26 = smov 0   ;;  %s1267_s27 = smov 0  }
   0xb   :  { %s1269_s28 = smov 0   ;;  %s1271_s29 = smov 0  }
   0xc LB: > { %1488 = sst [smem:[#allocation18_spill]] %s1192_s24  ;;  %s1292_s30 = sadd.s32 4294967295, %s1212_s29   ;;  %s1212_s29 = sphi %s1271_s29, %s27_s29   ;;  %s1208_s28 = sphi %s1269_s28, %s1508_s28   ;;  %s1204_s27 = sphi %s1267_s27, %s1507_s27   ;;  %s1200_s26 = sphi %s1265_s26, %s1506_s26   ;;  %s1196_s25 = sphi %s1263_s25, %s1510_s25   ;;  %s1192_s24 = sphi %s1261_s24, %s1509_s24  }
   0xd   : > { %1489 = sst [smem:[#allocation19_spill]] %s1200_s26  ;;  %s876_s8 = sadd.s32 4294967294, %s1212_s29  }
   0xe   : > { %1490 = sst [smem:[#allocation20_spill]] %s1208_s28  ;;  %p61_p0 = scmp.ne.s32.totalorder %s1196_s25, %s1192_s24 }
   0xf   : > { %p62_p1 = scmp.eq.s32.totalorder %s1292_s30, 0  ;;  %p218_p2 = scmp.eq.s32.totalorder %s1292_s30, 1 }
  0x10   : > { %p224_p3 = scmp.eq.s32.totalorder %s876_s8, 1  ;;  %p877_p5 = scmp.ge.s32.totalorder %s1212_s29, 1 }
  0x11   : > { %p1301_p4 = por %p62_p1, %p61_p0  ;;  %p231_p7 = scmp.lt.s32.totalorder %s1212_s29, 3 }
  0x12   : > { %p1306_p6 = por %p224_p3, %p61_p0  ;;  %s1494_s2 = sld [smem:[#allocation24_spill]] }
  0x13   : > { %p1314_p8 = pnand %p877_p5, %p231_p7  ;;  %s1214_s15 = smov [#allocation9]  }
  0x14   : > { %s1492_s10 = scalar_select %p1306_p6, 1, 0 }
  0x15   : > { %p912_p9 = pneg %p1314_p8  ;;  %s244_s16 = sshll.u32 %s1214_s15, 4  ;;  %s245_s16 = int_to_ptr.vmem [resolvable:$true] %s244_s16 }
  0x16   : > { %1493 = sst [smem:[#allocation21_spill]] %s1492_s10  ;;  %p880_p11 = scmp.ge.s32.totalorder %s1212_s29, 2 }
  0x17   : > { %p913_p10 = pnand %p912_p9, %p62_p1  ;;  %s1496_s3 = sld [smem:[#allocation25_spill]] }
  0x18   : > { %s242_s13 = sshll.u32 %s1494_s2, 4  ;;  %s1477_s20 = smov 128   ;;  %s243_s13 = int_to_ptr.hbm [resolvable:$true] %s242_s13 }
  0x19   : > { %s1479_s21 = smov 8   ;;  %s1217_s22 = smov [#allocation10]  }
  0x1a   : > { %915 = dma.hbm_to_vmem [thread:$0]  (!%p913_p10), %s243_s13, 512, %s245_s16, [#allocation8], %s1477_s20, %s1477_s20, %s1479_s21  }
  0x1b   : > { %s258_s23 = sshll.u32 %s1217_s22, 4  ;;  %s39_s8 = sadd.s32 1, %s1208_s28  ;;  %s259_s23 = int_to_ptr.vmem [resolvable:$true] %s258_s23 }
  0x1c   : > { %s48_s11 = sadd.s32 1, %s1200_s26  ;;  %p41_p12 = scmp.ge.s32.totalorder %s39_s8, 2 }
  0x1d   : > { %s256_s19 = sshll.u32 %s1496_s3, 4  ;;  %p55_p13 = scmp.ne.s32.totalorder %s1200_s26, %s1196_s25  ;;  %s257_s19 = int_to_ptr.hbm [resolvable:$true] %s256_s19 }
  0x1e   : > { %918 = dma.hbm_to_vmem [thread:$0]  (!%p913_p10), %s257_s19, 512, %s259_s23, [#allocation11], %s1477_s20, %s1477_s20, %s1479_s21  }
  0x1f   : > { %p56_p0 = scmp.eq.s32.totalorder %s1212_s29, 0  ;;  %p932_p3 = scmp.lt.s32.totalorder %s1212_s29, 2 }
  0x20   : > { %s1512_s8 = smov (%p41_p12, %s39_s8), 0  ;;  %p1346_p7 = por %p218_p2, %p55_p13 }
  0x21   : > { %1497 = sst [smem:[#allocation22_spill]] %s1512_s8  ;;  %p1340_p5 = por %p56_p0, %p55_p13 }
  0x22   : > { %s43_s15 = ssub.s32 %s1208_s28, %s1512_s8  ;;  %s281_s16 = sand.u32 1, %s1200_s26  }
  0x23   : > { %p46_p9 = scmp.eq.s32.totalorder %s43_s15, 0  ;;  %s881_s17 = sshll.u32 %s281_s16, 5 }
  0x24   : > { %s896_s18 = sshll.u32 %s1208_s28, 5  ;;  %s285_s2 = scalar_lea.vmem [#allocation4], %s881_s17 }
  0x25   : > { %s1355_s19 = scalar_select %p46_p9, %s1200_s26, %s48_s11  }
  0x26   : > { %s291_s20 = scalar_lea.hbm %s1469_s0, %s896_s18  ;;  %s294_s3 = sshll.u32 %s285_s2, 4  ;;  %s295_s3 = int_to_ptr.vmem [resolvable:$true] %s294_s3 }
  0x27   : > { %1500 = sst [smem:[#allocation23_spill]] %s1355_s19  ;;  %s292_s21 = sshll.u32 %s291_s20, 4  ;;  %s293_s21 = int_to_ptr.hbm [resolvable:$true] %s292_s21 }
  0x28   : > { %p920_p2 = pnand %p932_p3, %p1340_p5  ;;  %s314_s15 = scalar_lea.hbm %s1470_s1, %s896_s18 }
  0x29   : > { %s308_s28 = scalar_lea.vmem [#allocation7], %s881_s17  ;;  %s315_s19 = sshll.u32 %s314_s15, 4  ;;  %s316_s19 = int_to_ptr.hbm [resolvable:$true] %s315_s19 }
  0x2a   : > { %s317_s11 = sshll.u32 %s308_s28, 4  ;;  %s282_s26 = scalar_lea.sflag [#allocation5], %s281_s16  ;;  %s318_s11 = int_to_ptr.vmem [resolvable:$true] %s317_s11 }
  0x2b   : > { %s1501_s24 = smov 8   ;;  %s1502_s22 = smov 128  }
  0x2c   : > { %922 = dma.hbm_to_vmem [thread:$0]  (!%p920_p2), %s293_s21, 512, %s295_s3, %s282_s26, %s1502_s22, %s1502_s22, %s1501_s24  }
  0x2d   : > { %s304_s2 = sand.u32 1, %s1212_s29   ;;  %329 = sbr.rel (%p1314_p8) target bundleno = 829 (0x33d), region = 48 }
  0x2e   : > { %s305_s20 = scalar_lea.sflag [#allocation8], %s304_s2  ;;  %s1377_s28 = sand.u32 (!%p1314_p8), 1, %s1196_s25  }
  0x2f   : > { %925 = dma.hbm_to_vmem [thread:$0]  (!%p920_p2), %s316_s19, 512, %s318_s11, %s305_s20, %s1502_s22, %s1502_s22, %s1501_s24  }
  0x30   : > { %s888_s10 = sshll.u32 (!%p1314_p8), %s1377_s28, 5  ;;  %s332_s8 = scalar_lea.sflag (!%p1314_p8), [#allocation5], %s1377_s28 }
  0x31   : > { %s335_s3 = scalar_lea.vmem (!%p1314_p8), [#allocation4], %s888_s10 }
  0x32   : > { %1171 = dma.done.wait (%p1301_p4), %s332_s8, 512  }
  0x33   : > { %1173 = vsyncadd (%p1301_p4), %s332_s8, 4294966784  ;;  %s341_s24 = sand.u32 1, %s1292_s30   ;;  %s345_s14 = scalar_lea.vmem [#allocation7], %s888_s10 }
  0x34   : > { %s342_s26 = scalar_lea.sflag [#allocation8], %s341_s24 }
  0x35   : > { %1175 = dma.done.wait (%p1301_p4), %s342_s26, 512  }
  0x36   : > { %1177 = vsyncadd (%p1301_p4), %s342_s26, 4294966784 }
  0x37   : > { %1179 = dma.done.wait (%p62_p1), [#allocation8], 512  }
  0x38   : > { %1181 = vsyncadd (%p62_p1), [#allocation8], 4294966784 }
  0x39   : > { %1183 = dma.done.wait (%p62_p1), [#allocation11], 512  }
  0x3a   : > { %1185 = vsyncadd (%p62_p1), [#allocation11], 4294966784  ;;  %vm407_vm0 = vcmask 523264   ;;  %v398_v0 = vld [vmem:[%s335_s3] sm:$0xff]  ;;  %v400_v1 = vld [vmem:[%s335_s3 + $0x10] sm:$0xff]  ;;  %v1218_v16 = vmov 0   ;;  %s751_s16 = scalar_lea.hbm %s1476_s7, %s1204_s27 }
  0x3b   : > { %v408_v2 = vsel %vm407_vm0, %v398_v0, 0.0  ;;  %v414_v3 = vsel %vm407_vm0, %v400_v1, 0.0  ;;  %v402_v4 = vld [vmem:[%s345_s14] sm:$0xff]  ;;  %v399_v6 = vld [vmem:[%s335_s3 + $0x8] sm:$0xff]  ;;  %v401_v7 = vld [vmem:[%s335_s3 + $0x18] sm:$0xff]  ;;  %991 = vset.pattern.permute.xlu2 %v1218_v16  ;;  %992 = vset.pattern.permute.xlu0 %v1218_v16  ;;  %vm395_vm1 = vcmask 253952  }
  0x3c   : > { %409 = vadd.xlane.f32.xlu0 %v408_v2  ;;  %415 = vadd.xlane.f32.xlu1 %v414_v3  ;;  %v531_v5 = vsel %vm407_vm0, %v402_v4, 0.0  ;;  %v403_v8 = vld [vmem:[%s345_s14 + $0x8] sm:$0xff]  ;;  %v411_v9 = vsel %vm407_vm0, %v399_v6, 0.0  ;;  %v417_v10 = vsel %vm407_vm0, %v401_v7, 0.0  ;;  %v404_v12 = vld [vmem:[%s345_s14 + $0x10] sm:$0xff]  ;;  %v405_v13 = vld [vmem:[%s345_s14 + $0x18] sm:$0xff] }
  0x3d   : > { %532 = vadd.xlane.f32.xlu2 %v531_v5  ;;  %v534_v11 = vsel %vm407_vm0, %v403_v8, 0.0  ;;  %v537_v14 = vsel %vm407_vm0, %v404_v12, 0.0  ;;  %v540_v15 = vsel %vm407_vm0, %v405_v13, 0.0  ;;  %993 = vset.pattern.permute.xlu1 %v1218_v16  ;;  %vm516_vm2 = vcmask 130112   ;;  %s390_s15 = scalar_lea.vmem [#allocation12], %s1377_s28  ;;  %s755_s22 = sshll.u32 %s751_s16, 4  ;;  %s756_s22 = int_to_ptr.hbm [resolvable:$true] %s755_s22 }
  0x3e   : > { %vm520_vm3 = vcmask 195712   ;;  %vm524_vm4 = vcmask 261312   ;;  %vm659_vm5 = vcmask 261120   ;;  %s753_s11 = sshll.u32 %s390_s15, 4  ;;  %s743_s27 = scalar_lea.sflag [#allocation6], %s1377_s28  ;;  %s754_s11 = int_to_ptr.vmem [resolvable:$true] %s753_s11 }
  0x3f   : > { %s1132_s2 = sshra.s32 %s756_s22, 4  ;;  %s1138_s3 = scalar_lea.hbm %s1476_s7, 2  ;;  %s1133_s2 = int_to_ptr.hbm [resolvable:$true] %s1132_s2 }
  0x40   : > { %s1134_s20 = scalar_lea.hbm %s1133_s2, 1  ;;  %p1139_p10 = scmp.lt.s32.totalorder %s1133_s2, %s1476_s7 }
  0x41   : > { %p1135_p1 = scmp.ne.s32.totalorder %s1133_s2, %s1134_s20  ;;  %p1140_p12 = scmp.lt.s32.totalorder %s1138_s3, %s1134_s20 }
  0x43   : > { %p1136_p4 = pnand %p1135_p1, %p1346_p7  ;;  %p1141_p13 = por %p1140_p12, %p1139_p10 }
  0x44   : > { %412 = vadd.xlane.f32.xlu0 %v411_v9  ;;  %418 = vadd.xlane.f32.xlu1 %v417_v10 }
  0x45   : > { %535 = vadd.xlane.f32.xlu2 %v534_v11  ;;  %p1137_p8 = pneg %p1136_p4 }
  0x47   : > { %p1142_p0 = pnand %p1141_p13, %p1137_p8 }
  0x4c   : > { %538 = vadd.xlane.f32.xlu0 %v537_v14  ;;  %541 = vadd.xlane.f32.xlu1 %v540_v15 }
  0xaf   : > { %v410_v17 = vpop.xlane.xlu0 %409  ;;  %v416_v36 = vpop.xlane.xlu1 %415 }
  0xb0   : > { %v424_v18 = vperm.slane %v410_v17, 0  ;;  %v425_v19 = vperm.slane %v410_v17, 1  ;;  %v426_v20 = vperm.slane %v410_v17, 2  ;;  %v427_v21 = vperm.slane %v410_v17, 3  ;;  %v533_v56 = vpop.xlane.xlu2 %532 }
  0xb1   : > { %v428_v22 = vperm.slane %v410_v17, 4  ;;  %v429_v23 = vperm.slane %v410_v17, 5  ;;  %v430_v24 = vperm.slane %v410_v17, 6  ;;  %v431_v25 = vperm.slane %v410_v17, 7 }
  0xb2   : > { %456 = vst [vmem:[#allocation1] ss:$9 sm:$0xff] %v424_v18  ;;  %v440_v37 = vperm.slane %v416_v36, 0  ;;  %v441_v38 = vperm.slane %v416_v36, 1  ;;  %v442_v39 = vperm.slane %v416_v36, 2  ;;  %v443_v41 = vperm.slane %v416_v36, 3 }
  0xb3   : > { %458 = vst [vmem:[#allocation1 + $0x1] ss:$9 sm:$0xff] %v425_v19  ;;  %v444_v42 = vperm.slane %v416_v36, 4  ;;  %v445_v43 = vperm.slane %v416_v36, 5  ;;  %v446_v44 = vperm.slane %v416_v36, 6  ;;  %v447_v45 = vperm.slane %v416_v36, 7 }
  0xb4   : > { %460 = vst [vmem:[#allocation1 + $0x2] ss:$9 sm:$0xff] %v426_v20  ;;  %v547_v57 = vperm.slane %v533_v56, 0  ;;  %v548_v58 = vperm.slane %v533_v56, 1  ;;  %v549_v59 = vperm.slane %v533_v56, 2  ;;  %v550_v61 = vperm.slane %v533_v56, 3 }
  0xb5   : > { %462 = vst [vmem:[#allocation1 + $0x3] ss:$9 sm:$0xff] %v427_v21  ;;  %v551_v62 = vperm.slane %v533_v56, 4  ;;  %v552_v63 = vperm.slane %v533_v56, 5  ;;  %v553_v0 = vperm.slane %v533_v56, 6  ;;  %v554_v1 = vperm.slane %v533_v56, 7 }
  0xb6   : > { %464 = vst [vmem:[#allocation1 + $0x4] ss:$9 sm:$0xff] %v428_v22 }
  0xb7   : > { %466 = vst [vmem:[#allocation1 + $0x5] ss:$9 sm:$0xff] %v429_v23  ;;  %v413_v26 = vpop.xlane.xlu0 %412  ;;  %v419_v46 = vpop.xlane.xlu1 %418 }
  0xb8   : > { %468 = vst [vmem:[#allocation1 + $0x6] ss:$9 sm:$0xff] %v430_v24  ;;  %v432_v27 = vperm.slane %v413_v26, 0  ;;  %v433_v28 = vperm.slane %v413_v26, 1  ;;  %v434_v29 = vperm.slane %v413_v26, 2  ;;  %v435_v31 = vperm.slane %v413_v26, 3  ;;  %v536_v2 = vpop.xlane.xlu2 %535 }
  0xb9   : > { %470 = vst [vmem:[#allocation1 + $0x7] ss:$9 sm:$0xff] %v431_v25  ;;  %v436_v32 = vperm.slane %v413_v26, 4  ;;  %v437_v33 = vperm.slane %v413_v26, 5  ;;  %v438_v34 = vperm.slane %v413_v26, 6  ;;  %v439_v35 = vperm.slane %v413_v26, 7 }
  0xba   : > { %v448_v47 = vperm.slane %v419_v46, 0  ;;  %v449_v48 = vperm.slane %v419_v46, 1  ;;  %v450_v49 = vperm.slane %v419_v46, 2  ;;  %v451_v51 = vperm.slane %v419_v46, 3 }
  0xbb   : > { %v452_v52 = vperm.slane %v419_v46, 4  ;;  %v453_v53 = vperm.slane %v419_v46, 5  ;;  %v454_v54 = vperm.slane %v419_v46, 6  ;;  %v455_v55 = vperm.slane %v419_v46, 7 }
  0xbc   : > { %v555_v3 = vperm.slane %v536_v2, 0  ;;  %v556_v4 = vperm.slane %v536_v2, 1  ;;  %v557_v5 = vperm.slane %v536_v2, 2  ;;  %v558_v7 = vperm.slane %v536_v2, 3 }
  0xbd   : > { %v559_v8 = vperm.slane %v536_v2, 4  ;;  %v560_v9 = vperm.slane %v536_v2, 5  ;;  %v561_v10 = vperm.slane %v536_v2, 6  ;;  %v562_v11 = vperm.slane %v536_v2, 7 }
  0xbf   : > { %v539_v12 = vpop.xlane.xlu0 %538  ;;  %v542_v22 = vpop.xlane.xlu1 %541 }
  0xc0   : > { %v471_v30 = vld [vmem:[#allocation1] sm:$0xff]  ;;  %v563_v13 = vperm.slane %v539_v12, 0  ;;  %v564_v14 = vperm.slane %v539_v12, 1  ;;  %v565_v15 = vperm.slane %v539_v12, 2  ;;  %v566_v16 = vperm.slane %v539_v12, 3 }
  0xc1   : > { %472 = vst [vmem:[#allocation1] ss:$9 sm:$0xff] %v432_v27  ;;  %500 = vperm.xlu2 %991, %v471_v30   ;;  %v567_v18 = vperm.slane %v539_v12, 4  ;;  %v568_v19 = vperm.slane %v539_v12, 5  ;;  %v569_v20 = vperm.slane %v539_v12, 6  ;;  %v570_v21 = vperm.slane %v539_v12, 7 }
  0xc2   : > { %473 = vst [vmem:[#allocation1 + $0x1] ss:$9 sm:$0xff] %v433_v28  ;;  %v571_v23 = vperm.slane %v542_v22, 0  ;;  %v572_v24 = vperm.slane %v542_v22, 1  ;;  %v573_v25 = vperm.slane %v542_v22, 2  ;;  %v574_v26 = vperm.slane %v542_v22, 3 }
  0xc3   : > { %474 = vst [vmem:[#allocation1 + $0x2] ss:$9 sm:$0xff] %v434_v29  ;;  %v575_v28 = vperm.slane %v542_v22, 4  ;;  %v576_v29 = vperm.slane %v542_v22, 5  ;;  %v577_v30 = vperm.slane %v542_v22, 6 }
  0xc4   : > { %475 = vst [vmem:[#allocation1 + $0x3] ss:$9 sm:$0xff] %v435_v31  ;;  %v578_v31 = vperm.slane %v542_v22, 7 }
  0xc5   : > { %476 = vst [vmem:[#allocation1 + $0x4] ss:$9 sm:$0xff] %v436_v32 }
  0xc6   : > { %477 = vst [vmem:[#allocation1 + $0x5] ss:$9 sm:$0xff] %v437_v33  ;;  %v1219_v33 = vmov 0.0  }
  0xc7   : > { %478 = vst [vmem:[#allocation1 + $0x6] ss:$9 sm:$0xff] %v438_v34  ;;  %v654_v34 = vld [vmem:[#allocation9 + $0x18] sm:$0xff] }
  0xc8   : > { %479 = vst [vmem:[#allocation1 + $0x7] ss:$9 sm:$0xff] %v439_v35  ;;  %v653_v35 = vld [vmem:[#allocation9 + $0x10] sm:$0xff]  ;;  %698 = vmatpush.msra.mxu1 %v654_v34 }
  0xc9   : > { %396 = vst.msk [vmem:[#allocation2] sm:$0x1] %vm395_vm1, %v1219_v33 }
  0xca   : > { %397 = vst.msk [vmem:[#allocation3] sm:$0x1] %vm395_vm1, %v1219_v33  ;;  %699 = vmatpush.msra.mxu1 %v653_v35 }
  0xcf   : > { %v480_v40 = vld [vmem:[#allocation1] sm:$0xff] }
  0xd0   : > { %481 = vst [vmem:[#allocation1] ss:$9 sm:$0xff] %v440_v37  ;;  %503 = vperm.xlu0 %992, %v480_v40   ;;  %v652_v37 = vld [vmem:[#allocation9 + $0x8] sm:$0xff]  ;;  %v511_v40 = vlaneseq }
  0xd1   : > { %482 = vst [vmem:[#allocation1 + $0x1] ss:$9 sm:$0xff] %v441_v38  ;;  %v651_v38 = vld [vmem:[#allocation9] sm:$0xff]  ;;  %700 = vmatpush.msra.mxu1 %v652_v37 }
  0xd2   : > { %483 = vst [vmem:[#allocation1 + $0x2] ss:$9 sm:$0xff] %v442_v39 }
  0xd3   : > { %484 = vst [vmem:[#allocation1 + $0x3] ss:$9 sm:$0xff] %v443_v41  ;;  %701 = vmatpush.msra.mxu1 %v651_v38  ;;  %v512_v41 = vand.u32 127, %v511_v40  ;;  %v737_v40 = vld [vmem:[%s1474_s5] sm:$0x1] }
  0xd4   : > { %485 = vst [vmem:[#allocation1 + $0x4] ss:$9 sm:$0xff] %v444_v42 }
  0xd5   : > { %486 = vst [vmem:[#allocation1 + $0x5] ss:$9 sm:$0xff] %v445_v43  ;;  %v514_v42 = vadd.s32 4294967288, %v512_v41  ;;  %v518_v46 = vadd.s32 4294967280, %v512_v41 }
  0xd6   : > { %487 = vst [vmem:[#allocation1 + $0x6] ss:$9 sm:$0xff] %v446_v44 }
  0xd7   : > { %488 = vst [vmem:[#allocation1 + $0x7] ss:$9 sm:$0xff] %v447_v45 }
  0xde   : > { %v489_v50 = vld [vmem:[#allocation1] sm:$0xff] }
  0xdf   : > { %490 = vst [vmem:[#allocation1] ss:$9 sm:$0xff] %v448_v47  ;;  %506 = vperm.xlu2 %991, %v489_v50  }
  0xe0   : > { %491 = vst [vmem:[#allocation1 + $0x1] ss:$9 sm:$0xff] %v449_v48  ;;  %v522_v48 = vadd.s32 4294967272, %v512_v41 }
  0xe1   : > { %492 = vst [vmem:[#allocation1 + $0x2] ss:$9 sm:$0xff] %v450_v49 }
  0xe2   : > { %493 = vst [vmem:[#allocation1 + $0x3] ss:$9 sm:$0xff] %v451_v51 }
  0xe3   : > { %494 = vst [vmem:[#allocation1 + $0x4] ss:$9 sm:$0xff] %v452_v52  ;;  %v406_v52 = vld [vmem:[#allocation2] sm:$0x1] }
  0xe4   : > { %495 = vst [vmem:[#allocation1 + $0x5] ss:$9 sm:$0xff] %v453_v53 }
  0xe5   : > { %496 = vst [vmem:[#allocation1 + $0x6] ss:$9 sm:$0xff] %v454_v54 }
  0xe6   : > { %497 = vst [vmem:[#allocation1 + $0x7] ss:$9 sm:$0xff] %v455_v55 }
  0xed   : > { %v498_v60 = vld [vmem:[#allocation1] sm:$0xff] }
  0xee   : > { %579 = vst [vmem:[#allocation1] ss:$9 sm:$0xff] %v547_v57 }
  0xef   : > { %581 = vst [vmem:[#allocation1 + $0x1] ss:$9 sm:$0xff] %v548_v58 }
  0xf0   : > { %583 = vst [vmem:[#allocation1 + $0x2] ss:$9 sm:$0xff] %v549_v59  ;;  %v658_v59 = vld [vmem:[#allocation10 + $0x18] sm:$0xff] }
  0xf1   : > { %585 = vst [vmem:[#allocation1 + $0x3] ss:$9 sm:$0xff] %v550_v61  ;;  %675 = vmatpush.msra.mxu0 %v658_v59  ;;  %v656_v61 = vld [vmem:[#allocation10 + $0x8] sm:$0xff] }
  0xf2   : > { %587 = vst [vmem:[#allocation1 + $0x4] ss:$9 sm:$0xff] %v551_v62  ;;  %v655_v62 = vld [vmem:[#allocation10] sm:$0xff] }
  0xf3   : > { %589 = vst [vmem:[#allocation1 + $0x5] ss:$9 sm:$0xff] %v552_v63 }
  0xf4   : > { %591 = vst [vmem:[#allocation1 + $0x6] ss:$9 sm:$0xff] %v553_v0 }
  0xf5   : > { %593 = vst [vmem:[#allocation1 + $0x7] ss:$9 sm:$0xff] %v554_v1 }
  0xfc   : > { %v594_v6 = vld [vmem:[#allocation1] sm:$0xff] }
  0xfd   : > { %595 = vst [vmem:[#allocation1] ss:$9 sm:$0xff] %v555_v3  ;;  %623 = vperm.xlu1 %993, %v594_v6   ;;  %v530_v6 = vld [vmem:[#allocation3] sm:$0x1] }
  0xfe   : > { %596 = vst [vmem:[#allocation1 + $0x1] ss:$9 sm:$0xff] %v556_v4 }
  0xff   : > { %597 = vst [vmem:[#allocation1 + $0x2] ss:$9 sm:$0xff] %v557_v5 }
 0x100   : > { %598 = vst [vmem:[#allocation1 + $0x3] ss:$9 sm:$0xff] %v558_v7 }
 0x101   : > { %599 = vst [vmem:[#allocation1 + $0x4] ss:$9 sm:$0xff] %v559_v8 }
 0x102   : > { %600 = vst [vmem:[#allocation1 + $0x5] ss:$9 sm:$0xff] %v560_v9 }
 0x103   : > { %601 = vst [vmem:[#allocation1 + $0x6] ss:$9 sm:$0xff] %v561_v10 }
 0x104   : > { %602 = vst [vmem:[#allocation1 + $0x7] ss:$9 sm:$0xff] %v562_v11 }
 0x10b   : > { %v603_v17 = vld [vmem:[#allocation1] sm:$0xff] }
 0x10c   : > { %626 = vperm.xlu2 %991, %v603_v17   ;;  %604 = vst [vmem:[#allocation1] ss:$9 sm:$0xff] %v563_v13 }
 0x10d   : > { %605 = vst [vmem:[#allocation1 + $0x1] ss:$9 sm:$0xff] %v564_v14 }
 0x10e   : > { %606 = vst [vmem:[#allocation1 + $0x2] ss:$9 sm:$0xff] %v565_v15  ;;  %v706_v15 = vld [vmem:[%s1473_s4] sm:$0x1] }
 0x10f   : > { %607 = vst [vmem:[#allocation1 + $0x3] ss:$9 sm:$0xff] %v566_v16 }
 0x110   : > { %608 = vst [vmem:[#allocation1 + $0x4] ss:$9 sm:$0xff] %v567_v18 }
 0x111   : > { %609 = vst [vmem:[#allocation1 + $0x5] ss:$9 sm:$0xff] %v568_v19  ;;  %v1220_v19 = vmov 32.0  }
 0x112   : > { %610 = vst [vmem:[#allocation1 + $0x6] ss:$9 sm:$0xff] %v569_v20  ;;  %994 = vrcp.f32 %v1220_v19 }
 0x113   : > { %611 = vst [vmem:[#allocation1 + $0x7] ss:$9 sm:$0xff] %v570_v21 }
 0x114   : > { %509 = vperm.xlu2 %991, %v498_v60   ;;  %v657_v60 = vld [vmem:[#allocation10 + $0x10] sm:$0xff] }
 0x115   : > { %676 = vmatpush.msra.mxu0 %v657_v60 }
 0x117   : > { %677 = vmatpush.msra.mxu0 %v656_v61 }
 0x118   : > { %v995_v20 = vpop.eup %994 }
 0x119   : > { %678 = vmatpush.msra.mxu0 %v655_v62  ;;  %v712_v21 = vmul.f32 32.0, %v995_v20  ;;  %vm716_vm6 = vweird.f32 %v995_v20 }
 0x11a   : > { %v612_v27 = vld [vmem:[#allocation1] sm:$0xff] }
 0x11b   : > { %629 = vperm.xlu1 %993, %v612_v27   ;;  %613 = vst [vmem:[#allocation1] ss:$9 sm:$0xff] %v571_v23  ;;  %v501_v36 = vpop.permute.xlu2 %500  ;;  %v713_v22 = vsub.f32 1.0, %v712_v21 }
 0x11c   : > { %614 = vst [vmem:[#allocation1 + $0x1] ss:$9 sm:$0xff] %v572_v24  ;;  %v513_v47 = vperm.slane %v501_v36, %v512_v41 }
 0x11d   : > { %615 = vst [vmem:[#allocation1 + $0x2] ss:$9 sm:$0xff] %v573_v25  ;;  %v714_v23 = vmul.f32 %v995_v20, %v713_v22 }
 0x11e   : > { %616 = vst [vmem:[#allocation1 + $0x3] ss:$9 sm:$0xff] %v574_v26 }
 0x11f   : > { %617 = vst [vmem:[#allocation1 + $0x4] ss:$9 sm:$0xff] %v575_v28  ;;  %v715_v24 = vadd.f32 %v995_v20, %v714_v23 }
 0x120   : > { %618 = vst [vmem:[#allocation1 + $0x5] ss:$9 sm:$0xff] %v576_v29 }
 0x121   : > { %619 = vst [vmem:[#allocation1 + $0x6] ss:$9 sm:$0xff] %v577_v30  ;;  %v717_v25 = vsel %vm716_vm6, %v995_v20, %v715_v24 }
 0x122   : > { %620 = vst [vmem:[#allocation1 + $0x7] ss:$9 sm:$0xff] %v578_v31 }
 0x129   : > { %v621_v32 = vld [vmem:[#allocation1] sm:$0xff] }
 0x12a   : > { %632 = vperm.xlu1 %993, %v621_v32  }
 0x139   : > { %v507_v39 = vpop.permute.xlu2 %506 }
 0x13a   : > { %v519_v50 = vperm.slane %v507_v39, %v518_v46 }
 0x142   : > { %v504_v43 = vpop.permute.xlu0 %503 }
 0x143   : > { %v515_v45 = vperm.slane %v504_v43, %v514_v42  ;;  %v739_v43 = vld [vmem:[%s1475_s6] sm:$0x1] }
 0x145   : > { %v517_v49 = vsel %vm516_vm2, %v515_v45, %v513_v47 }
 0x146   : > { %v521_v54 = vsel %vm520_vm3, %v519_v50, %v517_v49 }
 0x166   : > { %v627_v44 = vpop.permute.xlu2 %626 }
 0x167   : > { %v635_v3 = vperm.slane %v627_v44, %v514_v42 }
 0x16e   : > { %v510_v51 = vpop.permute.xlu2 %509 }
 0x16f   : > { %v523_v53 = vperm.slane %v510_v51, %v522_v48  ;;  %v624_v63 = vpop.permute.xlu1 %623 }
 0x170   : > { %v634_v1 = vperm.slane %v624_v63, %v512_v41 }
 0x171   : > { %v525_v55 = vsel %vm524_vm4, %v523_v53, %v521_v54 }
 0x172   : > { %v527_v56 = vadd.f32 %v525_v55, %v406_v52  ;;  %v636_v5 = vsel %vm516_vm2, %v635_v3, %v634_v1 }
 0x174   : > { %529 = vst.msk [vmem:[#allocation2] sm:$0x1] %vm395_vm1, %v527_v56 }
 0x17b   : > { %v647_v57 = vld [vmem:[#allocation2] sm:$0x1] }
 0x17c   : > { %v648_v58 = vmul.f32 0.015625, %v647_v57 }
 0x17e   : > { %893 = vmatmul.msk.f32.vlgmr.msra.gmra.mxu1 %vm659_vm5, %v648_v58 }
 0x18d   : > { %v630_v0 = vpop.permute.xlu1 %629 }
 0x18e   : > { %v637_v2 = vperm.slane %v630_v0, %v518_v46 }
 0x190   : > { %v638_v8 = vsel %vm520_vm3, %v637_v2, %v636_v5 }
 0x19c   : > { %v633_v4 = vpop.permute.xlu1 %632 }
 0x19d   : > { %v639_v7 = vperm.slane %v633_v4, %v522_v48 }
 0x19f   : > { %v640_v9 = vsel %vm524_vm4, %v639_v7, %v638_v8 }
 0x1a0   : > { %v642_v10 = vadd.f32 %v640_v9, %v530_v6 }
 0x1a2   : > { %643 = vst.msk [vmem:[#allocation3] sm:$0x1] %vm395_vm1, %v642_v10 }
 0x1a9   : > { %v649_v11 = vld [vmem:[#allocation3] sm:$0x1] }
 0x1aa   : > { %v650_v12 = vmul.f32 0.015625, %v649_v11 }
 0x1ac   : > { %892 = vmatmul.msk.f32.vlgmr.msra.gmra.mxu0 %vm659_vm5, %v650_v12 }
 0x1fb   : > { %v703_v13 = vpop.f32.mrf.mxu1 }
 0x229   : > { %v680_v14 = vpop.f32.mrf.mxu0 }
 0x22a   : > { %v704_v16 = vadd.f32 %v703_v13, %v680_v14 }
 0x22c   : > { %v707_v17 = vadd.f32 %v706_v15, %v704_v16 }
 0x22e   : > { %v708_v18 = vsel %vm395_vm1, %v707_v17, 0.0 }
 0x22f   : > { %709 = vadd.xlane.f32.xlu0 %v708_v18 }
 0x2a2   : > { %v710_v26 = vpop.xlane.xlu0 %709 }
 0x2a3   : > { %v718_v27 = vmul.f32 %v717_v25, %v710_v26 }
 0x2a5   : > { %v719_v28 = vsub.f32 %v707_v17, %v718_v27 }
 0x2a7   : > { %v720_v29 = vmul.f32 %v719_v28, %v719_v28 }
 0x2a9   : > { %v721_v30 = vsel %vm395_vm1, %v720_v29, 0.0 }
 0x2aa   : > { %722 = vadd.xlane.f32.xlu2 %v721_v30 }
 0x31d   : > { %v723_v31 = vpop.xlane.xlu2 %722 }
 0x31e   : > { %v724_v32 = vmul.f32 %v723_v31, %v717_v25 }
 0x320   : > { %v725_v33 = vadd.f32 1e-05, %v724_v32 }
 0x322   : > { %996 = vrsqrt.f32 %v725_v33  ;;  %vm732_vm8 = vweird.f32 %v725_v33 }
 0x328   : > { %v997_v34 = vpop.eup %996 }
 0x329   : > { %v727_v35 = vmul.f32 %v997_v34, %v725_v33  ;;  %vm733_vm7 = vweird.f32 %v997_v34 }
 0x32a   : > { %vm734_vm9 = vmor %vm732_vm8, %vm733_vm7 }
 0x32b   : > { %v728_v36 = vmul.f32 %v997_v34, %v727_v35 }
 0x32d   : > { %v729_v37 = vmul.f32 0.5, %v728_v36 }
 0x32f   : > { %v730_v38 = vsub.f32 1.5, %v729_v37 }
 0x331   : > { %v731_v39 = vmul.f32 %v997_v34, %v730_v38 }
 0x333   : > { %v735_v41 = vsel %vm734_vm9, %v997_v34, %v731_v39 }
 0x334   : > { %v736_v42 = vmul.f32 %v735_v41, %v719_v28 }
 0x336   : > { %v738_v44 = vmul.f32 %v737_v40, %v736_v42 }
 0x338   : > { %v740_v45 = vadd.f32 %v739_v43, %v738_v44 }
 0x33a   : > { %741 = vst.msk [vmem:[%s390_s15] sm:$0x1] %vm395_vm1, %v740_v45 }
 0x33b   : > { %1145 = shalt.err (!%p1142_p0)
}
 0x33c   : > { %910 = dma.vmem_to_hbm [thread:$0]  (%p1346_p7), %s754_s11, 16, %s756_s22, %s743_s27  }
 0x33d PF: > { %s1503_s28 = sld [smem:[#allocation18_spill]]  ;;  %p927_p3 = pnand %p880_p11, %p1306_p6 }
 0x33f   : > { %p928_p5 = pneg %p927_p3 }
 0x343   : > { %s767_s30 = sand.u32 1, %s1503_s28  }
 0x344   : > { %s768_s9 = scalar_lea.sflag [#allocation6], %s767_s30 }
 0x345   : > { %1187 = dma.done.wait (%p928_p5), %s768_s9, 16  }
 0x346   : > { %1189 = vsyncadd (%p928_p5), %s768_s9, 4294967280  ;;  %s27_s29 = sadd.s32 1, %s1212_s29   ;;  %s1505_s21 = sld [smem:[#allocation19_spill]] }
 0x347   : > { %p24_p9 = scmp.ge.s32.totalorder %s27_s29, 4   ;;  %s1506_s26 = sld [smem:[#allocation23_spill]] }
 0x348   : > { %s1507_s27 = sld [smem:[#allocation20_spill]]  ;;  %s1509_s24 = smov %s1196_s25 }
 0x349   : > { %s1508_s28 = sld [smem:[#allocation22_spill]]  ;;  %26 = sbr.rel (!%p24_p9) target bundleno = 12 (0xc), region = 136 }
 0x34c   : > { %s1510_s25 = smov %s1505_s21 }
 0x34e   :  { %773 = vsyncpa [#allocation5], 1 }
 0x34f   :  { %775 = vsyncpa [#allocation5 + $0x1], 1 }
 0x350   :  { %776 = vsyncpa [#allocation8], 1 }
 0x351   :  { %778 = vsyncpa [#allocation8 + $0x1], 1 }
 0x352   :  { %779 = vsyncpa [#allocation11], 1 }
 0x353   :  { %780 = vsyncpa [#allocation6], 1 }
 0x354   :  { %782 = vsyncpa [#allocation6 + $0x1], 1 }

</bundles_post_ra>
